<compile_context>
chip_gen: v5e
topology: v5e:2x2
jax: 0.10.0
libtpu: 0.0.40
codegen_flags: <defaults>
</compile_context>

<pallas_src>
import functools
import itertools

import numpy as np
import jax
import jax.numpy as jnp
from jax.experimental import pallas as pl
from jax.experimental.pallas import tpu as pltpu

try:  # optional: use scipy's Hungarian if available, else exact brute force
    from scipy.optimize import linear_sum_assignment as _scipy_lsa
except Exception:  # pragma: no cover
    _scipy_lsa = None


def _round_up(x, m):
    return ((int(x) + m - 1) // m) * m


# ----------------------------------------------------------------------------
# Pallas kernel: batched cost matrix for the Hungarian matcher
#   grid = (B,) ; each step processes one (padded) sample:
#     logits_ref : (1, NQ_PAD, C)    f32   pred class logits (gathered)
#     cls_ref    : (1, 1, NG_PAD)    i32   target class ids (0 in padding)
#     ocd_ref    : (1, 2P, NQ_PAD)   f32   pred point coords, transposed
#     tcd_ref    : (1, 2P, NG_PAD)   f32   target point coords, transposed
#     c_ref      : (1, NQ_PAD, NG_PAD) f32 cost matrix (lane-dense output)
# ----------------------------------------------------------------------------
def _cost_kernel(logits_ref, cls_ref, ocd_ref, tcd_ref, c_ref, *,
                 w_class_bg, w_class_fg, w_coord):
    # ---- focal-loss classification cost (softmax focal, gamma=2) ------------
    logits = logits_ref[0]                                   # (NQ, C)
    nc = logits.shape[-1]
    m = jnp.max(logits, axis=-1, keepdims=True)
    z = logits - m
    lse = jnp.log(jnp.sum(jnp.exp(z), axis=-1, keepdims=True))
    logp = z - lse                                           # (NQ, C)
    p = jnp.exp(logp)

    cls = cls_ref[0]                                         # (1, NG) int32
    ng = cls.shape[-1]
    class_iota = jax.lax.broadcasted_iota(jnp.int32, (nc, ng), 0)
    onehot_t = (class_iota == cls).astype(jnp.float32)       # (C, NG)

    # one-hot selection as MXU matmuls (exact: HIGHEST precision)
    p_sel = jnp.dot(p, onehot_t, preferred_element_type=jnp.float32,
                    precision=jax.lax.Precision.HIGHEST)     # (NQ, NG)
    logp_sel = jnp.dot(logp, onehot_t, preferred_element_type=jnp.float32,
                       precision=jax.lax.Precision.HIGHEST)  # (NQ, NG)

    # class weight folded into alpha constants (bg / fg)
    alpha_w = jnp.where(cls == 0, w_class_bg, w_class_fg)    # (1, NG) f32
    one_m_p = 1.0 - p_sel
    cost_class = (-alpha_w) * (one_m_p * one_m_p) * logp_sel  # (NQ, NG)

    # ---- masked point-coordinate cost ---------------------------------------
    ocd = ocd_ref[0]                                         # (2P, NQ)
    tcd = tcd_ref[0]                                         # (2P, NG)
    diff = ocd[:, :, None] - tcd[:, None, :]                 # (2P, NQ, NG) lane-dense
    mask = diff < 1.0                                        # signed diff, as in reference
    cnt = jnp.sum(mask.astype(jnp.float32), axis=0)          # (NQ, NG)
    ssum = jnp.sum(jnp.abs(jnp.where(mask, diff, 0.0)), axis=0)
    # TODO(synk): the PyTorch reference produces NaN when no element passes the
    # mask (0/0); we clamp the count to 1 (cost 0) to keep the assignment finite.
    inv_cnt = pl.reciprocal(jnp.maximum(cnt, 1.0), approx=True)

    c_ref[0] = cost_class + (w_coord * ssum) * inv_cnt


def make_batched_cost_fn(w_class, w_coord, alpha_bg):
    """Build a jitted, batched cost-matrix function (one pallas_call per frame)."""
    w_bg = float(w_class) * float(alpha_bg)
    w_fg = float(w_class) * (1.0 - float(alpha_bg))
    kernel = functools.partial(_cost_kernel, w_class_bg=w_bg, w_class_fg=w_fg,
                               w_coord=float(w_coord))

    @jax.jit
    def cost_fn(cls_pred, coord_pred, idx_pad, tgt_class_pad, tgt_coord_t_pad):
        # cls_pred      : (B, Nq_total, C)       f32
        # coord_pred    : (B, Nq_total, P, 2)    f32
        # idx_pad       : (B, NQ_PAD)            i32  (unmatched query indices, 0-padded)
        # tgt_class_pad : (B, 1, NG_PAD)         i32
        # tgt_coord_t_pad: (B, 2P, NG_PAD)       f32
        B, nq_pad = idx_pad.shape
        C = cls_pred.shape[-1]
        P = coord_pred.shape[2]
        p2 = 2 * P
        ng_pad = tgt_class_pad.shape[-1]

        batch_idx = jnp.arange(B, dtype=jnp.int32)[:, None]
        logits = cls_pred.astype(jnp.float32)[batch_idx, idx_pad]       # (B, NQ_PAD, C)
        coords = coord_pred.astype(jnp.float32)[batch_idx, idx_pad]     # (B, NQ_PAD, P, 2)
        pred_coord_t = coords.reshape(B, nq_pad, p2).transpose(0, 2, 1)  # (B, 2P, NQ_PAD)

        return pl.pallas_call(
            kernel,
            out_shape=jax.ShapeDtypeStruct((B, nq_pad, ng_pad), jnp.float32),
            grid_spec=pltpu.PrefetchScalarGridSpec(
                num_scalar_prefetch=0,
                grid=(B,),
                in_specs=[
                    pl.BlockSpec((1, nq_pad, C), lambda b: (b, 0, 0)),
                    pl.BlockSpec((1, 1, ng_pad), lambda b: (b, 0, 0)),
                    pl.BlockSpec((1, p2, nq_pad), lambda b: (b, 0, 0)),
                    pl.BlockSpec((1, p2, ng_pad), lambda b: (b, 0, 0)),
                ],
                out_specs=pl.BlockSpec((1, nq_pad, ng_pad), lambda b: (b, 0, 0)),
            ),
            compiler_params=pltpu.CompilerParams(
                dimension_semantics=("parallel",)),
        )(logits, tgt_class_pad, pred_coord_t, tgt_coord_t_pad)

    return cost_fn


# ----------------------------------------------------------------------------
# Host-side assignment (mirrors the PyTorch control flow)
# ----------------------------------------------------------------------------
def _bruteforce_lsa(C):
    C = np.asarray(C, dtype=np.float64)
    nr, nc = C.shape
    if nr == 0 or nc == 0:
        return np.zeros(0, np.int64), np.zeros(0, np.int64)
    if nr >= nc:
        best_cost, best_rows = None, None
        for rows in itertools.permutations(range(nr), nc):
            cost = C[list(rows), list(range(nc))].sum()
            if best_cost is None or cost < best_cost:
                best_cost, best_rows = cost, rows
        rows = np.asarray(best_rows, dtype=np.int64)
        cols = np.arange(nc, dtype=np.int64)
    else:
        best_cost, best_cols = None, None
        for cols in itertools.permutations(range(nc), nr):
            cost = C[np.arange(nr), list(cols)].sum()
            if best_cost is None or cost < best_cost:
                best_cost, best_cols = cost, cols
        rows = np.arange(nr, dtype=np.int64)
        cols = np.asarray(best_cols, dtype=np.int64)
    order = np.argsort(rows, kind='stable')
    return rows[order], cols[order]


def linear_sum_assignment_host(C):
    if _scipy_lsa is not None:
        r, c = _scipy_lsa(np.asarray(C))
        return np.asarray(r, dtype=np.int64), np.asarray(c, dtype=np.int64)
    # TODO(synk): the Hungarian algorithm has no clean Pallas equivalent; exact
    # brute-force fallback is valid only for the tiny sizes used here.
    return _bruteforce_lsa(C)


class HungarianMatcherJax:
    def __init__(self, match_weights, road_element_cls, label_bg_weight):
        self.cost_class = match_weights['class_weight']
        self.cost_pt_coord = match_weights['pt_coord_weight']
        self.cost_pt_confidence = match_weights['pt_confidence_weight']
        assert self.cost_class != 0 or self.cost_pt_coord != 0 or self.cost_pt_confidence != 0
        self.num_classes = len(road_element_cls)
        self.alpha_bg = float(label_bg_weight)
        self._cost_fn = make_batched_cost_fn(self.cost_class, self.cost_pt_coord,
                                             self.alpha_bg)

    def compute_cost_batched(self, cls_pred, coord_pred, idx_pad,
                             tgt_class_pad, tgt_coord_t_pad):
        """One device call for all samples; returns (B, NQ_PAD, NG_PAD) on host."""
        cost = self._cost_fn(cls_pred, coord_pred, idx_pad,
                             tgt_class_pad, tgt_coord_t_pad)
        return np.asarray(jax.block_until_ready(cost))

    def __call__(self, outputs, targets):
        """Standalone single-sample interface (API parity with the reference)."""
        out_class = jnp.asarray(outputs['pred_class'])
        out_coord = jnp.asarray(outputs['pred_pt_coord'])
        nq = int(out_class.shape[0])
        labels = np.asarray(targets['labels']).reshape(-1).astype(np.int32)
        points = np.asarray(targets['points'])
        ng = int(labels.shape[0])
        if nq == 0 or ng == 0:
            return [np.zeros(0, np.int64), np.zeros(0, np.int64)]
        P = int(points.shape[1])
        nq_pad = _round_up(max(nq, 8), 8)
        ng_pad = _round_up(max(ng, 1), 128)
        idx_pad = np.zeros((1, nq_pad), dtype=np.int32)
        idx_pad[0, :nq] = np.arange(nq)
        tgt_class_pad = np.zeros((1, 1, ng_pad), dtype=np.int32)
        tgt_class_pad[0, 0, :ng] = labels
        tgt_coord_t_pad = np.zeros((1, 2 * P, ng_pad), dtype=np.float32)
        tgt_coord_t_pad[0, :, :ng] = points[:, :, 0:2].reshape(ng, 2 * P).T
        C = self.compute_cost_batched(out_class[None], out_coord[None],
                                      idx_pad, tgt_class_pad, tgt_coord_t_pad)
        rows, cols = linear_sum_assignment_host(C[0, :nq, :ng])
        return [rows, cols]


class ClipMatcherJax:
    def __init__(self, num_samples, batch_size, num_query, match_weights,
                 road_element_cls, label_bg_weight):
        self.gt_instances = []
        self.matcher = HungarianMatcherJax(match_weights, road_element_cls, label_bg_weight)
        self._current_frame_idx = 0
        self._num_samples = num_samples
        self.batch_size = batch_size
        self.num_query = num_query
        self._nq_pad = _round_up(max(num_query, 8), 8)

    def _step(self):
        self._current_frame_idx += 1

    def initialize_for_single_clip(self, road_gt):
        self.gt_instances = []
        self._current_frame_idx = 0
        for idx in range(self._num_samples):
            gt = dict(
                obj_ids=np.asarray(road_gt['gt_ids'][idx]),
                labels=np.asarray(road_gt['gt_class'][idx]),
                points=np.asarray(road_gt['gt_points'][idx]),
                points_padding_mask=np.asarray(road_gt['gt_pt_padding_flags'][idx]),
                batch_num=np.asarray(road_gt['gt_num'][idx]),
            )
            self.gt_instances.append(gt)

    @staticmethod
    def _sort_matched_indices(matched_indices):
        matched_indices = np.asarray(matched_indices, dtype=np.int64).reshape(-1, 2)
        src = matched_indices[:, 0]
        tgt = matched_indices[:, 1]
        order = np.argsort(tgt, kind='stable')
        return np.concatenate([src[order][:, None], tgt[order][:, None]], axis=1)

    def _prepare_sample(self, track_instances, sample_gt, sample_idx):
        """Host-side bookkeeping: previous matches + unmatched query/GT indices."""
        matched_gt_ids = np.array(track_instances['matched_gt_ids'][sample_idx],
                                  copy=True).astype(np.int64)
        matched_gt_indices = np.full((self.num_query,), -1, dtype=np.int64)
        gt_obj_ids = np.asarray(sample_gt['obj_ids'])

        i, j = np.where(matched_gt_ids[:, None] == gt_obj_ids[None, :])
        matched_gt_indices[i] = j

        full_track_indices = np.arange(self.num_query, dtype=np.int64)
        matched_track_mask = matched_gt_indices >= 0
        prev_matched_indices = np.stack([full_track_indices[matched_track_mask],
                                         matched_gt_indices[matched_track_mask]], axis=1)
        unmatched_track_indices = full_track_indices[matched_gt_ids == -1]

        gt_matched_indices = matched_gt_indices[matched_gt_indices != -1]
        num_gt = gt_obj_ids.shape[0]
        all_gt_match_status = np.full((num_gt,), True)
        all_gt_match_status[gt_matched_indices] = False
        unmatched_gt_indices = np.arange(num_gt, dtype=np.int64)[all_gt_match_status]

        needs_kernel = (unmatched_gt_indices.size > 0) and (unmatched_track_indices.size > 0)
        return dict(sample_gt=sample_gt,
                    matched_gt_ids=matched_gt_ids,
                    prev_matched_indices=prev_matched_indices,
                    unmatched_track_indices=unmatched_track_indices,
                    unmatched_gt_indices=unmatched_gt_indices,
                    needs_kernel=needs_kernel)

    def forward(self, track_instances):
        gt = self.gt_instances[self._current_frame_idx]
        cum = np.concatenate([np.zeros(1, dtype=np.int64),
                              np.cumsum(np.asarray(gt['batch_num'], dtype=np.int64))])

        # ---- phase A: host bookkeeping for every sample ----------------------
        prep = []
        max_unmatched_gt = 0
        for b in range(self.batch_size):
            sl = slice(int(cum[b]), int(cum[b + 1]))
            sample_gt = {k: gt[k][sl]
                         for k in ('obj_ids', 'labels', 'points', 'points_padding_mask')}
            info = self._prepare_sample(track_instances, sample_gt, b)
            prep.append(info)
            if info['needs_kernel']:
                max_unmatched_gt = max(max_unmatched_gt, info['unmatched_gt_indices'].size)

        # ---- phase B: ONE padded, batched kernel call + ONE host transfer ----
        cost_host = None
        if max_unmatched_gt > 0:
            nq_pad = self._nq_pad
            ng_pad = _round_up(max_unmatched_gt, 128)
            B = self.batch_size
            P = int(np.asarray(track_instances['point_coord_pred']).shape[2])
            p2 = 2 * P

            idx_pad = np.zeros((B, nq_pad), dtype=np.int32)
            tgt_class_pad = np.zeros((B, 1, ng_pad), dtype=np.int32)
            tgt_coord_t_pad = np.zeros((B, p2, ng_pad), dtype=np.float32)
            for b, info in enumerate(prep):
                if not info['needs_kernel']:
                    continue
                uti = info['unmatched_track_indices']
                ugi = info['unmatched_gt_indices']
                idx_pad[b, :uti.size] = uti.astype(np.int32)
                tgt_class_pad[b, 0, :ugi.size] = \
                    np.asarray(info['sample_gt']['labels'])[ugi].reshape(-1)
                pts = np.asarray(info['sample_gt']['points'])[ugi][:, :, 0:2]
                tgt_coord_t_pad[b, :, :ugi.size] = pts.reshape(ugi.size, p2).T

            cost_host = self.matcher.compute_cost_batched(
                jnp.asarray(track_instances['cls_pred']),
                jnp.asarray(track_instances['point_coord_pred']),
                idx_pad, tgt_class_pad, tgt_coord_t_pad)

        # ---- phase C: host-side Hungarian + result assembly -------------------
        batch_matched_indices = []
        for b, info in enumerate(prep):
            prev = info['prev_matched_indices']
            if not info['needs_kernel']:
                batch_matched_indices.append(self._sort_matched_indices(prev))
                continue
            uti = info['unmatched_track_indices']
            ugi = info['unmatched_gt_indices']
            Csub = cost_host[b, :uti.size, :ugi.size]
            rows, cols = linear_sum_assignment_host(Csub)
            new_matched = np.stack([uti[rows], ugi[cols]], axis=1).astype(np.int64)

            matched_gt_ids = info['matched_gt_ids']
            matched_gt_ids[new_matched[:, 0]] = \
                np.asarray(info['sample_gt']['obj_ids'])[new_matched[:, 1]].astype(np.int64)
            track_instances['matched_gt_ids'][b] = matched_gt_ids

            all_matched = np.concatenate([new_matched, prev], axis=0)
            batch_matched_indices.append(self._sort_matched_indices(all_matched))

        self._step()
        return track_instances, batch_matched_indices


# ----------------------------------------------------------------------------
# Demo
# ----------------------------------------------------------------------------
if __name__ == "__main__":
    key = jax.random.PRNGKey(0)
    keys = iter(jax.random.split(key, 16))

    batch_size, num_query, num_points = 2, 8, 8
    road_element_cls = ['background', 'lane', 'curb', 'crosswalk']
    num_classes = len(road_element_cls)
    num_samples = 1
    match_weights = {'class_weight': 2.0, 'pt_coord_weight': 5.0, 'pt_confidence_weight': 1.0}
    label_bg_weight = 0.25

    # -------- ground-truth data for one frame (concatenated over the batch) --
    gt_num = np.array([3, 2], dtype=np.int32)              # per-sample GT counts
    total_gt = int(gt_num.sum())
    gt_ids = np.array([10, 11, 12, 20, 21], dtype=np.int64)
    gt_class = np.asarray(jax.random.randint(next(keys), (total_gt, 1), 0, num_classes),
                          dtype=np.int64)
    gt_points = np.asarray(jax.random.uniform(next(keys), (total_gt, num_points, 3),
                                              minval=-1.0, maxval=1.0), dtype=np.float32)
    gt_pt_padding_flags = np.asarray(
        jax.random.bernoulli(next(keys), 0.8, (total_gt, num_points)), dtype=np.float32)
    road_gt = {'gt_ids': [gt_ids], 'gt_class': [gt_class], 'gt_points': [gt_points],
               'gt_pt_padding_flags': [gt_pt_padding_flags], 'gt_num': [gt_num]}

    # -------- track instances (predictions) ---------------------------------
    matched_gt_ids = np.full((batch_size, num_query), -1, dtype=np.int64)
    matched_gt_ids[0, 2] = 10   # query 2 in sample 0 already tracks GT id 10

    track_instances = {
        'query_embed': jax.random.normal(next(keys), (num_query, 32), dtype=jnp.float32),
        'matched_gt_ids': matched_gt_ids,
        'cls_pred': jax.random.normal(next(keys), (batch_size, num_query, num_classes),
                                      dtype=jnp.float32),
        'point_confidence_pred': jax.random.uniform(next(keys),
                                                    (batch_size, num_query, num_points)),
        'point_coord_pred': jax.random.uniform(next(keys),
                                               (batch_size, num_query, num_points, 2),
                                               minval=-1.0, maxval=1.0),
    }

    clip_matcher = ClipMatcherJax(num_samples, batch_size, num_query,
                                  match_weights, road_element_cls, label_bg_weight)
    clip_matcher.initialize_for_single_clip(road_gt)

    track_instances, batch_matched = clip_matcher.forward(track_instances)

    results = [jnp.asarray(m, dtype=jnp.int32) for m in batch_matched]
    jax.block_until_ready(results)
    print("KERNEL_OK")
</pallas_src>

<mosaic_0001>
module attributes {stable_mosaic.version = 11 : i64} {
  func.func @_cost_kernel(%arg0: i32, %arg1: memref<1x8x4xf32, #tpu.memory_space<vmem>>, %arg2: memref<1x1x128xi32, #tpu.memory_space<vmem>>, %arg3: memref<1x16x8xf32, #tpu.memory_space<vmem>>, %arg4: memref<1x16x128xf32, #tpu.memory_space<vmem>>, %arg5: memref<1x8x128xf32, #tpu.memory_space<vmem>>) attributes {dimension_semantics = [#tpu.dimension_semantics<parallel>], iteration_bounds = array<i64: 2>, scalar_prefetch = 0 : i64, scratch_operands = 0 : i64, tpu.core_type = #tpu.core_type<tc>, window_params = [{transform_indices = @transform_0, window_bounds = array<i64: 1, 8, 4>}, {transform_indices = @transform_1, window_bounds = array<i64: 1, 1, 128>}, {transform_indices = @transform_2, window_bounds = array<i64: 1, 16, 8>}, {transform_indices = @transform_3, window_bounds = array<i64: 1, 16, 128>}, {transform_indices = @transform_4, window_bounds = array<i64: 1, 8, 128>}]} {
    %c0 = arith.constant 0 : index
    %c0_0 = arith.constant 0 : index
    %c0_1 = arith.constant 0 : index
    %0 = vector.load %arg1[%c0, %c0_0, %c0_1] : memref<1x8x4xf32, #tpu.memory_space<vmem>>, vector<1x8x4xf32>
    %1 = vector.shape_cast %0 : vector<1x8x4xf32> to vector<8x4xf32>
    %cst = arith.constant dense<0xFF800000> : vector<8xf32>
    %2 = vector.multi_reduction <maximumf>, %1, %cst [1] : vector<8x4xf32> to vector<8xf32>
    %3 = vector.shape_cast %2 : vector<8xf32> to vector<8x1xf32>
    %4 = vector.broadcast %3 : vector<8x1xf32> to vector<8x4xf32>
    %5 = arith.subf %1, %4 : vector<8x4xf32>
    %6 = math.exp %5 : vector<8x4xf32>
    %cst_2 = arith.constant dense<0.000000e+00> : vector<8xf32>
    %7 = vector.multi_reduction <add>, %6, %cst_2 [1] : vector<8x4xf32> to vector<8xf32>
    %8 = vector.shape_cast %7 : vector<8xf32> to vector<8x1xf32>
    %9 = math.log %8 : vector<8x1xf32>
    %10 = vector.broadcast %9 : vector<8x1xf32> to vector<8x4xf32>
    %11 = arith.subf %5, %10 : vector<8x4xf32>
    %12 = math.exp %11 : vector<8x4xf32>
    %c0_3 = arith.constant 0 : index
    %c0_4 = arith.constant 0 : index
    %c0_5 = arith.constant 0 : index
    %13 = vector.load %arg2[%c0_3, %c0_4, %c0_5] : memref<1x1x128xi32, #tpu.memory_space<vmem>>, vector<1x1x128xi32>
    %14 = vector.shape_cast %13 : vector<1x1x128xi32> to vector<1x128xi32>
    %15 = tpu.iota {dimensions = array<i32: 0>} : vector<4x128xi32>
    %16 = vector.broadcast %14 : vector<1x128xi32> to vector<4x128xi32>
    %17 = arith.cmpi eq, %15, %16 : vector<4x128xi32>
    %18 = arith.extui %17 : vector<4x128xi1> to vector<4x128xi32>
    %19 = arith.sitofp %18 : vector<4x128xi32> to vector<4x128xf32>
    %cst_6 = arith.constant dense<0.000000e+00> : vector<8x128xf32>
    %20 = tpu.matmul %12, %19, %cst_6 {dimension_numbers = #tpu.dot_dimension_numbers<[1], [0], [0], [1], [0, 0, 1, 1], [], []>, precision = #tpu.contract_precision<fp32>} : vector<8x4xf32>, vector<4x128xf32>, vector<8x128xf32> -> vector<8x128xf32>
    %cst_7 = arith.constant dense<0.000000e+00> : vector<8x128xf32>
    %21 = tpu.matmul %11, %19, %cst_7 {dimension_numbers = #tpu.dot_dimension_numbers<[1], [0], [0], [1], [0, 0, 1, 1], [], []>, precision = #tpu.contract_precision<fp32>} : vector<8x4xf32>, vector<4x128xf32>, vector<8x128xf32> -> vector<8x128xf32>
    %c0_i32 = arith.constant 0 : i32
    %22 = vector.broadcast %c0_i32 : i32 to vector<1x128xi32>
    %23 = arith.cmpi eq, %14, %22 : vector<1x128xi32>
    %cst_8 = arith.constant 5.000000e-01 : f32
    %cst_9 = arith.constant 1.500000e+00 : f32
    %24 = vector.broadcast %cst_8 : f32 to vector<1x128xf32>
    %25 = vector.broadcast %cst_9 : f32 to vector<1x128xf32>
    %26 = arith.select %23, %24, %25 : vector<1x128xi1>, vector<1x128xf32>
    %cst_10 = arith.constant 1.000000e+00 : f32
    %27 = vector.broadcast %cst_10 : f32 to vector<8x128xf32>
    %28 = arith.subf %27, %20 : vector<8x128xf32>
    %cst_11 = arith.constant 0.000000e+00 : f32
    %29 = vector.broadcast %cst_11 : f32 to vector<1x128xf32>
    %30 = arith.subf %29, %26 : vector<1x128xf32>
    %31 = arith.mulf %28, %28 : vector<8x128xf32>
    %32 = vector.broadcast %30 : vector<1x128xf32> to vector<8x128xf32>
    %33 = arith.mulf %32, %31 : vector<8x128xf32>
    %34 = arith.mulf %33, %21 : vector<8x128xf32>
    %c0_12 = arith.constant 0 : index
    %c0_13 = arith.constant 0 : index
    %c0_14 = arith.constant 0 : index
    %35 = vector.load %arg3[%c0_12, %c0_13, %c0_14] : memref<1x16x8xf32, #tpu.memory_space<vmem>>, vector<1x16x8xf32>
    %36 = vector.shape_cast %35 : vector<1x16x8xf32> to vector<16x8xf32>
    %c0_15 = arith.constant 0 : index
    %c0_16 = arith.constant 0 : index
    %c0_17 = arith.constant 0 : index
    %37 = vector.load %arg4[%c0_15, %c0_16, %c0_17] : memref<1x16x128xf32, #tpu.memory_space<vmem>>, vector<1x16x128xf32>
    %38 = vector.shape_cast %37 : vector<1x16x128xf32> to vector<16x128xf32>
    %39 = vector.shape_cast %36 : vector<16x8xf32> to vector<16x8x1xf32>
    %40 = vector.shape_cast %38 : vector<16x128xf32> to vector<16x1x128xf32>
    %41 = vector.broadcast %39 : vector<16x8x1xf32> to vector<16x8x128xf32>
    %42 = vector.broadcast %40 : vector<16x1x128xf32> to vector<16x8x128xf32>
    %43 = arith.subf %41, %42 : vector<16x8x128xf32>
    %cst_18 = arith.constant 1.000000e+00 : f32
    %44 = vector.broadcast %cst_18 : f32 to vector<16x8x128xf32>
    %45 = arith.cmpf olt, %43, %44 : vector<16x8x128xf32>
    %46 = arith.extui %45 : vector<16x8x128xi1> to vector<16x8x128xi32>
    %47 = arith.sitofp %46 : vector<16x8x128xi32> to vector<16x8x128xf32>
    %cst_19 = arith.constant dense<0.000000e+00> : vector<8x128xf32>
    %48 = vector.multi_reduction <add>, %47, %cst_19 [0] : vector<16x8x128xf32> to vector<8x128xf32>
    %cst_20 = arith.constant 0.000000e+00 : f32
    %49 = vector.broadcast %cst_20 : f32 to vector<16x8x128xf32>
    %50 = arith.select %45, %43, %49 : vector<16x8x128xi1>, vector<16x8x128xf32>
    %51 = math.absf %50 : vector<16x8x128xf32>
    %cst_21 = arith.constant dense<0.000000e+00> : vector<8x128xf32>
    %52 = vector.multi_reduction <add>, %51, %cst_21 [0] : vector<16x8x128xf32> to vector<8x128xf32>
    %cst_22 = arith.constant 1.000000e+00 : f32
    %53 = vector.broadcast %cst_22 : f32 to vector<8x128xf32>
    %54 = arith.maximumf %48, %53 : vector<8x128xf32>
    %55 = tpu.reciprocal %54 {approx = true} : vector<8x128xf32> -> vector<8x128xf32>
    %cst_23 = arith.constant 5.000000e+00 : f32
    %56 = vector.broadcast %cst_23 : f32 to vector<8x128xf32>
    %57 = arith.mulf %56, %52 : vector<8x128xf32>
    %58 = arith.mulf %57, %55 : vector<8x128xf32>
    %59 = arith.addf %34, %58 : vector<8x128xf32>
    %c0_24 = arith.constant 0 : index
    %c0_25 = arith.constant 0 : index
    %c0_26 = arith.constant 0 : index
    %60 = vector.load %arg5[%c0_24, %c0_25, %c0_26] : memref<1x8x128xf32, #tpu.memory_space<vmem>>, vector<1x8x128xf32>
    %61 = vector.shape_cast %60 : vector<1x8x128xf32> to vector<8x128xf32>
    %62 = vector.shape_cast %59 : vector<8x128xf32> to vector<1x8x128xf32>
    tpu.vector_store %arg5[%c0_24, %c0_25, %c0_26], %62 {strides = array<i32>} : memref<1x8x128xf32, #tpu.memory_space<vmem>>, vector<1x8x128xf32>,
    return
  }
  func.func @transform_0(%arg0: i32) -> (i32, i32, i32) {
    %c0_i32 = arith.constant 0 : i32
    %c0_i32_0 = arith.constant 0 : i32
    %c0_i32_1 = arith.constant 0 : i32
    return %arg0, %c0_i32, %c0_i32_0 : i32, i32, i32
  }
  func.func @transform_1(%arg0: i32) -> (i32, i32, i32) {
    %c0_i32 = arith.constant 0 : i32
    %c0_i32_0 = arith.constant 0 : i32
    %c0_i32_1 = arith.constant 0 : i32
    return %arg0, %c0_i32, %c0_i32_0 : i32, i32, i32
  }
  func.func @transform_2(%arg0: i32) -> (i32, i32, i32) {
    %c0_i32 = arith.constant 0 : i32
    %c0_i32_0 = arith.constant 0 : i32
    %c0_i32_1 = arith.constant 0 : i32
    return %arg0, %c0_i32, %c0_i32_0 : i32, i32, i32
  }
  func.func @transform_3(%arg0: i32) -> (i32, i32, i32) {
    %c0_i32 = arith.constant 0 : i32
    %c0_i32_0 = arith.constant 0 : i32
    %c0_i32_1 = arith.constant 0 : i32
    return %arg0, %c0_i32, %c0_i32_0 : i32, i32, i32
  }
  func.func @transform_4(%arg0: i32) -> (i32, i32, i32) {
    %c0_i32 = arith.constant 0 : i32
    %c0_i32_0 = arith.constant 0 : i32
    %c0_i32_1 = arith.constant 0 : i32
    return %arg0, %c0_i32, %c0_i32_0 : i32, i32, i32
  }
}

</mosaic_0001>

<bundles_post_ra>
// kernel: cost_fn.1
= control target key start
LH: loop header
LB: loop body
LE: loop exit
PB: predicated region body
PF: predicated region fallthrough
CT: control target
= control target key end

     0   :  { %9 = vsyncpa [#allocation3], 0  ;;  %s1345_s0 = inlined_call_operand.vmem [shape: f32[2,8,4], index: 0, kind: input, shape index: {}]   ;;  %s1346_s1 = inlined_call_operand.vmem [shape: s32[2,1,128], index: 1, kind: input, shape index: {}]   ;;  %s1347_s2 = inlined_call_operand.vmem [shape: f32[2,16,8], index: 2, kind: input, shape index: {}]   ;;  %s1348_s3 = inlined_call_operand.vmem [shape: f32[2,16,128], index: 3, kind: input, shape index: {}]   ;;  %s1349_s4 = inlined_call_operand.hbm [shape: f32[2,8,128], index: 4, kind: output, shape index: {}]  }
   0x1   :  { %11 = vsyncpa [#allocation3 + $0x1], 0  ;;  %s1169_s15 = smov 0   ;;  %s1171_s16 = smov 0  }
   0x2   :  { %s1173_s17 = smov 0   ;;  %s1175_s18 = smov 0  }
   0x3 LB: > { %s1190_s19 = sadd.s32 4294967295, %s1140_s18   ;;  %s986_s20 = sadd.s32 4294967294, %s1140_s18   ;;  %s1140_s18 = sphi %s1175_s18, %s1355_s18   ;;  %s1136_s17 = sphi %s1173_s17, %s1354_s17   ;;  %s1132_s16 = sphi %s1171_s16, %s1353_s16   ;;  %s1128_s15 = sphi %s1169_s15, %s1352_s15  }
   0x4   : > { %s1194_s21 = sadd.s32 1, %s1140_s18   ;;  %s128_s22 = sadd.s32 1, %s1136_s17 }
   0x5   : > { %s125_s23 = ssub.s32 %s1140_s18, %s1194_s21  ;;  %p138_p0 = scmp.ne.s32.totalorder %s1136_s17, %s1132_s16 }
   0x6   : > { %p126_p1 = scmp.eq.s32.totalorder %s125_s23, 0  ;;  %p139_p2 = scmp.eq.s32.totalorder %s1190_s19, 1 }
   0x7   : > { %p144_p3 = scmp.ne.s32.totalorder %s1132_s16, %s1128_s15  ;;  %p145_p4 = scmp.eq.s32.totalorder %s986_s20, 1 }
   0x8   : > { %s1205_s24 = scalar_select %p126_p1, %s1136_s17, %s128_s22  }
   0x9   : > { %p1207_p5 = por %p139_p2, %p138_p0  ;;  %p1211_p6 = por %p145_p4, %p144_p3 }
   0xa   : > { %p989_p7 = scmp.ge.s32.totalorder %s1140_s18, 1  ;;  %p192_p8 = scmp.lt.s32.totalorder %s1140_s18, 3 }
   0xc   : > { %p193_p9 = pnand %p989_p7, %p192_p8 }
   0xd   : > { %p230_p10 = scmp.lt.s32.totalorder (!%p193_p9), %s1190_s19, 1  ;;  %s227_s22 = sand.u32 (!%p193_p9), 1, %s1132_s16  }
   0xe   : > { %196 = sbr.rel (%p193_p9) target bundleno = 457 (0x1c9), region = 36  ;;  %s990_s23 = sshll.u32 (!%p193_p9), %s227_s22, 3 }
  0x13   : > { %s1219_s27 = scalar_select %p230_p10, %s1190_s19, 1  ;;  %vm248_vm0 = vcmask 31744   ;;  %v264_v3 = vlaneseq  ;;  %v1142_v27 = vmov 0.0   ;;  %vm273_vm2 = vcmask 1043456  }
  0x15   : > { %s991_s28 = sshll.u32 %s1219_s27, 3  ;;  %s1230_s8 = scalar_lea.vmem %s1346_s1, %s1219_s27  ;;  %v265_v4 = vshrl.u32 %v264_v3, 7 }
  0x16   : > { %s233_s5 = scalar_lea.vmem %s1345_s0, %s991_s28  ;;  %s1023_s9 = sshll.u32 %s1219_s27, 4  ;;  %v1069_v2 = vld [vmem:[%s1230_s8] ss:$0 sm:$0xff] }
  0x17   : > { %v247_v0 = vld [vmem:[%s233_s5] sm:$0xff]  ;;  %s241_s12 = scalar_lea.vmem %s1347_s2, %s1023_s9  ;;  %1066 = vset.pattern.permute.xlu1 %v265_v4  ;;  %vm267_vm1 = vcmp.eq.s32.totalorder %v265_v4, %v1069_v2  ;;  %1067 = vset.pattern.permute.xlu2 %v265_v4  ;;  %s1256_s20 = scalar_lea.vmem %s1348_s3, %s1023_s9 }
  0x18   : > { %v249_v1 = vsel %vm248_vm0, %v247_v0, -inf  ;;  %v582_v5 = vld [vmem:[%s241_s12] sm:$0xff]  ;;  %1068 = vset.pattern.permute.xlu0 %v265_v4  ;;  %v583_v18 = vld [vmem:[%s241_s12 + $0x8] sm:$0xff]  ;;  %v996_v28 = vsel %vm267_vm1, 1.0, %v1142_v27  ;;  %s1020_s27 = sshll.u32 %s1190_s19, 3  ;;  %s229_s5 = scalar_lea.vmem [#allocation2], %s990_s23 }
  0x19   : > { %250 = vmax.xlane.f32.xlu0 %v249_v1  ;;  %v586_v6 = vperm.slane %v582_v5, 0  ;;  %v600_v7 = vperm.slane %v582_v5, 2  ;;  %v593_v8 = vperm.slane %v582_v5, 1  ;;  %v607_v11 = vperm.slane %v582_v5, 3  ;;  %998 = vmatpush.msk.msra.mxu3 %vm273_vm2, %v996_v28  ;;  %v584_v54 = vld [vmem:[%s1256_s20] sm:$0xff]  ;;  %s889_s30 = scalar_lea.hbm %s1349_s4, %s1020_s27  ;;  %s891_s6 = sshll.u32 %s229_s5, 4  ;;  %s892_s6 = int_to_ptr.vmem [resolvable:$true] %s891_s6 }
  0x1a   : > { %v621_v13 = vperm.slane %v582_v5, 5  ;;  %v628_v14 = vperm.slane %v582_v5, 6  ;;  %v635_v17 = vperm.slane %v582_v5, 7  ;;  %v642_v19 = vperm.slane %v583_v18, 0  ;;  %997 = vmatpush.msk.msra.mxu0 %vm273_vm2, %v996_v28  ;;  %s893_s7 = sshll.u32 %s889_s30, 4  ;;  %s879_s19 = scalar_lea.sflag [#allocation3], %s227_s22  ;;  %s894_s7 = int_to_ptr.hbm [resolvable:$true] %s893_s7 }
  0x1b   : > { %v649_v20 = vperm.slane %v583_v18, 1  ;;  %v614_v21 = vperm.slane %v582_v5, 4  ;;  %v663_v22 = vperm.slane %v583_v18, 3  ;;  %v677_v23 = vperm.slane %v583_v18, 5  ;;  %s1098_s12 = scalar_lea.hbm %s1349_s4, 16 }
  0x1c   : > { %v691_v24 = vperm.slane %v583_v18, 7  ;;  %v656_v25 = vperm.slane %v583_v18, 2  ;;  %v670_v26 = vperm.slane %v583_v18, 4  ;;  %v275_v29 = vsel %vm273_vm2, %v996_v28, 0 }
  0x1d   : > { %v319_v30 = vsub.f32 %v275_v29, %v275_v29  ;;  %v684_v31 = vperm.slane %v583_v18, 6  ;;  %v700_v56 = vrot.slane %v584_v54, 1  ;;  %v714_v58 = vperm.slane %v584_v54, 0 }
  0x1e   : > { %v701_v59 = vrot.slane %v584_v54, 2  ;;  %v702_v61 = vrot.slane %v584_v54, 3  ;;  %v703_v4 = vrot.slane %v584_v54, 4  ;;  %v705_v18 = vrot.slane %v584_v54, 6 }
  0x1f   : > { %591 = vperm.xlu1 %1066, %v586_v6   ;;  %605 = vperm.xlu2 %1067, %v600_v7   ;;  %v320_v32 = vand.u32 4294901760, %v319_v30  ;;  %v715_v60 = vperm.slane %v700_v56, 0  ;;  %v706_v29 = vrot.slane %v584_v54, 7 }
  0x20   : > { %346 = vmatpush.msra.mxu2 %v319_v30  ;;  %v717_v2 = vperm.slane %v702_v61, 0 }
  0x21   : > { %v321_v33 = vsub.f32 %v319_v30, %v320_v32  ;;  %395 = vmatpush.msrb.mxu0 %v320_v32 }
  0x22   : > { %1000 = vmatpush.msk.msrb.mxu2 %vm273_vm2, %v996_v28 }
  0x23   : > { %v322_v34 = vand.u32 4294901760, %v321_v33 }
  0x25   : > { %323 = vmatpush.msra.mxu1 %v322_v34  ;;  %472 = vmatpush.msrb.mxu3 %v322_v34 }
  0x27   : > { %598 = vperm.xlu1 %1066, %v593_v8   ;;  %612 = vperm.xlu2 %1067, %v607_v11  }
  0x28   : > { %999 = vmatpush.msk.msrb.mxu1 %vm273_vm2, %v996_v28 }
  0x2f   : > { %626 = vperm.xlu1 %1066, %v621_v13   ;;  %633 = vperm.xlu2 %1067, %v628_v14  }
  0x37   : > { %640 = vperm.xlu1 %1066, %v635_v17   ;;  %647 = vperm.xlu2 %1067, %v642_v19  }
  0x3f   : > { %654 = vperm.xlu1 %1066, %v649_v20   ;;  %661 = vperm.xlu2 %1067, %v656_v25  }
  0x47   : > { %668 = vperm.xlu1 %1066, %v663_v22   ;;  %675 = vperm.xlu2 %1067, %v670_v26  }
  0x4f   : > { %682 = vperm.xlu1 %1066, %v677_v23   ;;  %689 = vperm.xlu2 %1067, %v684_v31  }
  0x79   : > { %v606_v55 = vpop.permute.xlu2 %605 }
  0x81   : > { %v613_v62 = vpop.permute.xlu2 %612 }
  0x82   : > { %v749_v8 = vsub.f32 %v613_v62, %v717_v2 }
  0x84   : > { %vm765_vm6 = vcmp.lt.f32.partialorder %v749_v8, 1.0 }
  0x85   : > { %v828_v33 = vsel %vm765_vm6, %v749_v8, 0.0 }
  0x89   : > { %v634_v11 = vpop.permute.xlu2 %633 }
  0x8c   : > { %v251_v9 = vpop.xlane.xlu0 %250 }
  0x8d   : > { %v252_v10 = vsub.f32 %v247_v0, %v251_v9  ;;  %v716_v0 = vperm.slane %v701_v59, 0  ;;  %v704_v9 = vrot.slane %v584_v54, 5 }
  0x8f   : > { %v253_v12 = vmul.f32 1.442695, %v252_v10  ;;  %v748_v3 = vsub.f32 %v606_v55, %v716_v0  ;;  %v719_v17 = vperm.slane %v704_v9, 0 }
  0x91   : > { %1070 = vpow2.f32 %v253_v12  ;;  %v592_v53 = vpop.permute.xlu1 %591  ;;  %vm764_vm5 = vcmp.lt.f32.partialorder %v748_v3, 1.0  ;;  %v648_v34 = vpop.permute.xlu2 %647 }
  0x92   : > { %v746_v63 = vsub.f32 %v592_v53, %v714_v58  ;;  %v827_v23 = vsel %vm764_vm5, %v748_v3, 0.0 }
  0x94   : > { %vm762_vm3 = vcmp.lt.f32.partialorder %v746_v63, 1.0 }
  0x95   : > { %v1003_v6 = vsel %vm762_vm3, 1.0, %v1142_v27  ;;  %v825_v14 = vsel %vm762_vm3, %v746_v63, 0.0 }
  0x96   : > { %v841_v20 = vand.u32 2147483647, %v825_v14 }
  0x97   : > { %v1071_v15 = vpop.eup %1070 }
  0x98   : > { %v255_v16 = vsel %vm248_vm0, %v1071_v15, 0.0  ;;  %v1005_v15 = vsel %vm764_vm5, 1.0, %v1142_v27 }
  0x99   : > { %256 = vadd.xlane.f32.xlu0 %v255_v16  ;;  %v599_v57 = vpop.permute.xlu1 %598  ;;  %v662_v56 = vpop.permute.xlu2 %661 }
  0x9a   : > { %v747_v1 = vsub.f32 %v599_v57, %v715_v60 }
  0x9c   : > { %vm763_vm4 = vcmp.lt.f32.partialorder %v747_v1, 1.0 }
  0x9d   : > { %v1004_v7 = vsel %vm763_vm4, 1.0, %v1142_v27  ;;  %v826_v16 = vsel %vm763_vm4, %v747_v1, 0.0 }
  0x9e   : > { %v810_v13 = vadd.f32 %v1004_v7, %v1003_v6 }
  0xa0   : > { %v811_v22 = vadd.f32 %v1005_v15, %v810_v13 }
  0xa1   : > { %v627_v5 = vpop.permute.xlu1 %626  ;;  %v676_v15 = vpop.permute.xlu2 %675 }
  0xa2   : > { %v751_v26 = vsub.f32 %v627_v5, %v719_v17 }
  0xa4   : > { %vm767_vm8 = vcmp.lt.f32.partialorder %v751_v26, 1.0 }
  0xa9   : > { %v641_v25 = vpop.permute.xlu1 %640 }
  0xad   : > { %619 = vperm.xlu0 %1068, %v614_v21   ;;  %v842_v21 = vand.u32 2147483647, %v826_v16 }
  0xaf   : > { %v857_v31 = vadd.f32 %v842_v21, %v841_v20 }
  0xb5   : > { %696 = vperm.xlu0 %1068, %v691_v24   ;;  %v1006_v24 = vsel %vm765_vm6, 1.0, %v1142_v27 }
 0x10c   : > { %v257_v35 = vpop.xlane.xlu0 %256 }
 0x10d   : > { %1072 = vlog2.f32 %v257_v35 }
 0x113   : > { %v1073_v36 = vpop.eup %1072 }
 0x114   : > { %v259_v37 = vmul.f32 0.6931472, %v1073_v36 }
 0x116   : > { %v260_v38 = vsub.f32 %v252_v10, %v259_v37  ;;  %v718_v10 = vperm.slane %v703_v4, 0  ;;  %v721_v37 = vperm.slane %v706_v29, 0 }
 0x118   : > { %v261_v39 = vmul.f32 1.442695, %v260_v38  ;;  %v424_v40 = vsel %vm248_vm0, %v260_v38, 0  ;;  %v1269_v38 = vld [vmem:[%s1256_s20 + $0x8] sm:$0xff] }
 0x119   : > { %v443_v41 = vand.u32 4294901760, %v424_v40  ;;  %v708_v55 = vrot.slane %v1269_v38, 2  ;;  %v709_v0 = vrot.slane %v1269_v38, 3  ;;  %v710_v9 = vrot.slane %v1269_v38, 4 }
 0x11a   : > { %1074 = vpow2.f32 %v261_v39  ;;  %v844_v39 = vand.u32 2147483647, %v828_v33 }
 0x11b   : > { %v444_v43 = vsub.f32 %v424_v40, %v443_v41  ;;  %v724_v63 = vperm.slane %v708_v55, 0  ;;  %v725_v8 = vperm.slane %v709_v0, 0  ;;  %v726_v17 = vperm.slane %v710_v9, 0 }
 0x11d   : > { %v445_v47 = vand.u32 4294901760, %v444_v43  ;;  %v756_v7 = vsub.f32 %v662_v56, %v724_v63 }
 0x11f   : > { %v446_v50 = vsub.f32 %v444_v43, %v445_v47  ;;  %v620_v12 = vpop.permute.xlu0 %619  ;;  %vm772_vm13 = vcmp.lt.f32.partialorder %v756_v7, 1.0 }
 0x120   : > { %v1075_v42 = vpop.eup %1074  ;;  %v750_v19 = vsub.f32 %v620_v12, %v718_v10 }
 0x121   : > { %v271_v44 = vsel %vm248_vm0, %v1075_v42, 0  ;;  %v447_v52 = vand.u32 4294901760, %v446_v50  ;;  %v1008_v42 = vsel %vm767_vm8, 1.0, %v1142_v27 }
 0x122   : > { %v294_v45 = vand.u32 4294901760, %v271_v44  ;;  %vm766_vm7 = vcmp.lt.f32.partialorder %v750_v19, 1.0 }
 0x123   : > { %v1007_v35 = vsel %vm766_vm7, 1.0, %v1142_v27 }
 0x124   : > { %325 = vmatmul.f32.vlgmr.msra.gmra.mxu1 %v294_v45  ;;  %v295_v46 = vsub.f32 %v271_v44, %v294_v45  ;;  %v753_v44 = vsub.f32 %v641_v25, %v721_v37  ;;  %v690_v37 = vpop.permute.xlu2 %689 }
 0x125   : > { %1001 = vmatpush.msk.msra.mxu1 %vm273_vm2, %v996_v28 }
 0x126   : > { %349 = vmatmul.f32.vlgmr.msra.gmra.mxu2 %v295_v46  ;;  %v296_v48 = vand.u32 4294901760, %v295_v46  ;;  %vm769_vm10 = vcmp.lt.f32.partialorder %v753_v44, 1.0 }
 0x127   : > { %544 = vmatpush.msra.mxu2 %v320_v32  ;;  %v812_v32 = vadd.f32 %v1006_v24, %v811_v22  ;;  %v1010_v61 = vsel %vm769_vm10, 1.0, %v1142_v27  ;;  %v832_v4 = vsel %vm769_vm10, %v753_v44, 0.0  ;;  %v758_v24 = vsub.f32 %v676_v15, %v726_v17 }
 0x128   : > { %373 = vmatmul.f32.vlgmr.msra.gmra.mxu3 %v296_v48  ;;  %v297_v49 = vsub.f32 %v295_v46, %v296_v48  ;;  %v707_v46 = vrot.slane %v1269_v38, 1  ;;  %v848_v10 = vand.u32 2147483647, %v832_v4 }
 0x129   : > { %1002 = vmatpush.msk.msra.mxu3 %vm273_vm2, %v996_v28  ;;  %v720_v28 = vperm.slane %v705_v18, 0  ;;  %v711_v18 = vrot.slane %v1269_v38, 5  ;;  %vm774_vm15 = vcmp.lt.f32.partialorder %v758_v24, 1.0 }
 0x12a   : > { %v298_v51 = vand.u32 4294901760, %v297_v49  ;;  %v723_v54 = vperm.slane %v707_v46, 0  ;;  %v697_v46 = vpop.permute.xlu0 %696 }
 0x12b   : > { %v752_v36 = vsub.f32 %v634_v11, %v720_v28  ;;  %v727_v25 = vperm.slane %v711_v18, 0 }
 0x12c   : > { %299 = vmatmul.f32.vlgmr.msra.gmra.mxu0 %v298_v51  ;;  %419 = vmatmul.f32.vlgmr.msrb.gmra.mxu1 %v294_v45  ;;  %v830_v51 = vsel %vm767_vm8, %v751_v26, 0.0  ;;  %v712_v26 = vrot.slane %v1269_v38, 6 }
 0x12d   : > { %495 = vmatpush.msra.mxu0 %v319_v30  ;;  %v843_v30 = vand.u32 2147483647, %v827_v23  ;;  %vm768_vm9 = vcmp.lt.f32.partialorder %v752_v36, 1.0  ;;  %v846_v57 = vand.u32 2147483647, %v830_v51  ;;  %v1013_v23 = vsel %vm772_vm13, 1.0, %v1142_v27 }
 0x12e   : > { %448 = vmatmul.f32.vlgmr.msrb.gmra.mxu2 %v447_v52  ;;  %v1009_v52 = vsel %vm768_vm9, 1.0, %v1142_v27  ;;  %v831_v60 = vsel %vm768_vm9, %v752_v36, 0.0  ;;  %v713_v36 = vrot.slane %v1269_v38, 7 }
 0x12f   : > { %v858_v40 = vadd.f32 %v857_v31, %v843_v30  ;;  %v847_v1 = vand.u32 2147483647, %v831_v60 }
 0x130   : > { %474 = vmatmul.f32.vlgmr.msrb.gmra.mxu3 %v443_v41 }
 0x131   : > { %v859_v48 = vadd.f32 %v858_v40, %v844_v39 }
 0x134   : > { %397 = vmatmul.f32.vlgmr.msrb.gmra.mxu0 %v294_v45  ;;  %522 = vmatmul.f32.vlgmr.msra.gmra.mxu1 %v445_v47  ;;  %v722_v45 = vperm.slane %v1269_v38, 0  ;;  %v655_v47 = vpop.permute.xlu1 %654 }
 0x135   : > { %v755_v62 = vsub.f32 %v655_v47, %v723_v54 }
 0x136   : > { %546 = vmatmul.f32.vlgmr.msra.gmra.mxu2 %v443_v41  ;;  %v754_v53 = vsub.f32 %v648_v34, %v722_v45  ;;  %v729_v45 = vperm.slane %v713_v36, 0 }
 0x137   : > { %vm771_vm12 = vcmp.lt.f32.partialorder %v755_v62, 1.0 }
 0x138   : > { %568 = vmatmul.f32.vlgmr.msra.gmra.mxu3 %v443_v41  ;;  %v813_v41 = vadd.f32 %v1007_v35, %v812_v32  ;;  %vm770_vm11 = vcmp.lt.f32.partialorder %v754_v53, 1.0  ;;  %v1012_v14 = vsel %vm771_vm12, 1.0, %v1142_v27  ;;  %v834_v22 = vsel %vm771_vm12, %v755_v62, 0.0 }
 0x139   : > { %v1011_v5 = vsel %vm770_vm11, 1.0, %v1142_v27  ;;  %v833_v13 = vsel %vm770_vm11, %v754_v53, 0.0  ;;  %v850_v29 = vand.u32 2147483647, %v834_v22  ;;  %v835_v32 = vsel %vm772_vm13, %v756_v7, 0.0 }
 0x13a   : > { %v814_v49 = vadd.f32 %v1008_v42, %v813_v41  ;;  %v728_v35 = vperm.slane %v712_v26, 0  ;;  %v851_v40 = vand.u32 2147483647, %v835_v32  ;;  %v761_v51 = vsub.f32 %v697_v46, %v729_v45 }
 0x13c   : > { %498 = vmatmul.f32.vlgmr.msra.gmra.mxu0 %v444_v43  ;;  %v829_v43 = vsel %vm766_vm7, %v750_v19, 0.0  ;;  %v815_v58 = vadd.f32 %v1009_v52, %v814_v49  ;;  %v669_v6 = vpop.permute.xlu1 %668  ;;  %v849_v19 = vand.u32 2147483647, %v833_v13  ;;  %v760_v44 = vsub.f32 %v690_v37, %v728_v35 }
 0x13d   : > { %v845_v50 = vand.u32 2147483647, %v829_v43  ;;  %v757_v16 = vsub.f32 %v669_v6, %v725_v8  ;;  %v1015_v43 = vsel %vm774_vm15, 1.0, %v1142_v27  ;;  %vm777_vm2 = vcmp.lt.f32.partialorder %v761_v51, 1.0 }
 0x13e   : > { %v816_v3 = vadd.f32 %v1010_v61, %v815_v58  ;;  %vm776_vm1 = vcmp.lt.f32.partialorder %v760_v44, 1.0 }
 0x13f   : > { %v860_v59 = vadd.f32 %v859_v48, %v845_v50  ;;  %vm773_vm14 = vcmp.lt.f32.partialorder %v757_v16, 1.0  ;;  %v837_v50 = vsel %vm774_vm15, %v758_v24, 0.0  ;;  %v839_v4 = vsel %vm776_vm1, %v760_v44, 0.0 }
 0x140   : > { %v817_v12 = vadd.f32 %v1011_v5, %v816_v3  ;;  %v1014_v33 = vsel %vm773_vm14, 1.0, %v1142_v27  ;;  %v836_v42 = vsel %vm773_vm14, %v757_v16, 0.0  ;;  %v853_v54 = vand.u32 2147483647, %v837_v50  ;;  %v263_v3 = vld [vmem:[%s1230_s8] sm:$0x1] }
 0x141   : > { %v861_v2 = vadd.f32 %v860_v59, %v846_v57  ;;  %v852_v48 = vand.u32 2147483647, %v836_v42  ;;  %v1017_v59 = vsel %vm776_vm1, 1.0, %v1142_v27  ;;  %vm572_vm3 = vcmp.eq.s32.totalorder %v263_v3, 0  ;;  %s1092_s8 = sshra.s32 %s894_s7, 4  ;;  %s1093_s8 = int_to_ptr.hbm [resolvable:$true] %s1092_s8 }
 0x142   : > { %v818_v20 = vadd.f32 %v1012_v14, %v817_v12  ;;  %v840_v12 = vsel %vm777_vm2, %v761_v51, 0.0  ;;  %s1094_s9 = scalar_lea.hbm %s1093_s8, 8  ;;  %p1099_p0 = scmp.lt.s32.totalorder %s1093_s8, %s1349_s4 }
 0x143   : > { %v862_v11 = vadd.f32 %v861_v2, %v847_v1  ;;  %v1018_v2 = vsel %vm777_vm2, 1.0, %v1142_v27  ;;  %p1095_p11 = scmp.ne.s32.totalorder %s1093_s8, %s1094_s9  ;;  %p1100_p1 = scmp.lt.s32.totalorder %s1098_s12, %s1094_s9 }
 0x144   : > { %v683_v28 = vpop.permute.xlu1 %682  ;;  %v819_v31 = vadd.f32 %v1013_v23, %v818_v20 }
 0x145   : > { %v863_v21 = vadd.f32 %v862_v11, %v848_v10  ;;  %v759_v34 = vsub.f32 %v683_v28, %v727_v25  ;;  %v855_v10 = vand.u32 2147483647, %v839_v4  ;;  %p1096_p12 = pnand %p1095_p11, %p1207_p5  ;;  %p1101_p2 = por %p1100_p1, %p1099_p0 }
 0x146   : > { %v820_v41 = vadd.f32 %v1014_v33, %v819_v31 }
 0x147   : > { %v864_v30 = vadd.f32 %v863_v21, %v849_v19  ;;  %vm775_vm0 = vcmp.lt.f32.partialorder %v759_v34, 1.0  ;;  %v856_v19 = vand.u32 2147483647, %v840_v12  ;;  %p1097_p13 = pneg %p1096_p12 }
 0x148   : > { %v821_v49 = vadd.f32 %v1015_v43, %v820_v41  ;;  %v1016_v38 = vsel %vm775_vm0, 1.0, %v1142_v27  ;;  %v838_v58 = vsel %vm775_vm0, %v759_v34, 0.0  ;;  %v1143_v27 = vmov 1.5  }
 0x149   : > { %v865_v39 = vadd.f32 %v864_v30, %v850_v29  ;;  %v854_v0 = vand.u32 2147483647, %v838_v58  ;;  %v573_v17 = vsel %vm572_vm3, 0.5, %v1143_v27  ;;  %p1102_p3 = pnand %p1101_p2, %p1097_p13 }
 0x14a   : > { %v822_v55 = vadd.f32 %v1016_v38, %v821_v49  ;;  %v575_v22 = vsub.f32 0.0, %v573_v17 }
 0x14b   : > { %v866_v47 = vadd.f32 %v865_v39, %v851_v40 }
 0x14c   : > { %v823_v1 = vadd.f32 %v1017_v59, %v822_v55  ;;  %v578_v30 = vperm.slane %v575_v22, 0 }
 0x14d   : > { %v867_v53 = vadd.f32 %v866_v47, %v852_v48 }
 0x14e   : > { %v824_v7 = vadd.f32 %v1018_v2, %v823_v1 }
 0x14f   : > { %v868_v63 = vadd.f32 %v867_v53, %v853_v54 }
 0x150   : > { %v872_v15 = vmax.f32 %v824_v7, 1.0 }
 0x151   : > { %v869_v6 = vadd.f32 %v868_v63, %v854_v0 }
 0x152   : > { %1076 = vrcp.f32 %v872_v15 }
 0x153   : > { %v870_v18 = vadd.f32 %v869_v6, %v855_v10 }
 0x155   : > { %v871_v24 = vadd.f32 %v870_v18, %v856_v19 }
 0x157   : > { %v874_v32 = vmul.f32 5.0, %v871_v24 }
 0x158   : > { %v1077_v34 = vpop.eup %1076 }
 0x159   : > { %v875_v40 = vmul.f32 %v1077_v34, %v874_v32 }
 0x1a1   : > { %v326_v52 = vpop.f32.mrf.mxu1 }
 0x1a9   : > { %v300_v56 = vpop.f32.mrf.mxu0  ;;  %v350_v57 = vpop.f32.mrf.mxu2 }
 0x1aa   : > { %v327_v60 = vadd.f32 %v326_v52, %v300_v56  ;;  %v420_v8 = vpop.f32.mrf.mxu1 }
 0x1ab   : > { %v374_v61 = vpop.f32.mrf.mxu3 }
 0x1ac   : > { %v351_v62 = vadd.f32 %v350_v57, %v327_v60 }
 0x1ae   : > { %v375_v5 = vadd.f32 %v374_v61, %v351_v62 }
 0x1b1   : > { %v398_v9 = vpop.f32.mrf.mxu0  ;;  %v449_v13 = vpop.f32.mrf.mxu2 }
 0x1b2   : > { %v399_v11 = vadd.f32 %v398_v9, %v375_v5  ;;  %v523_v26 = vpop.f32.mrf.mxu1 }
 0x1b3   : > { %v475_v16 = vpop.f32.mrf.mxu3 }
 0x1b4   : > { %v421_v14 = vadd.f32 %v420_v8, %v399_v11  ;;  %v476_v21 = vadd.f32 %v475_v16, %v449_v13 }
 0x1b6   : > { %v574_v20 = vsub.f32 1.0, %v421_v14 }
 0x1b8   : > { %v576_v28 = vmul.f32 %v574_v20, %v574_v20 }
 0x1b9   : > { %v499_v23 = vpop.f32.mrf.mxu0  ;;  %v547_v31 = vpop.f32.mrf.mxu2 }
 0x1ba   : > { %v500_v25 = vadd.f32 %v499_v23, %v476_v21  ;;  %v580_v37 = vmul.f32 %v578_v30, %v576_v28 }
 0x1bb   : > { %v569_v35 = vpop.f32.mrf.mxu3 }
 0x1bc   : > { %v524_v29 = vadd.f32 %v523_v26, %v500_v25 }
 0x1be   : > { %v548_v33 = vadd.f32 %v547_v31, %v524_v29 }
 0x1c0   : > { %v570_v36 = vadd.f32 %v569_v35, %v548_v33 }
 0x1c2   : > { %v581_v39 = vmul.f32 %v580_v37, %v570_v36 }
 0x1c4   : > { %v876_v41 = vadd.f32 %v875_v40, %v581_v39 }
 0x1c6   : > { %877 = vst [vmem:[%s229_s5] sm:$0xff] %v876_v41 }
 0x1c7   : > { %1105 = shalt.err (!%p1102_p3)
}
 0x1c8   : > { %1025 = dma.vmem_to_hbm [thread:$0]  (%p1207_p5), %s892_s6, 128, %s894_s7, %s879_s19  }
 0x1c9 PF: > { %p1031_p4 = scmp.ge.s32.totalorder %s1140_s18, 2  ;;  %s905_s20 = sand.u32 1, %s1128_s15  }
 0x1ca   : > { %s906_s22 = scalar_lea.sflag [#allocation3], %s905_s20 }
 0x1cb   : > { %p1028_p7 = pnand %p1031_p4, %p1211_p6 }
 0x1cd   : > { %p1029_p8 = pneg %p1028_p7 }
 0x1cf   : > { %1123 = dma.done.wait (%p1029_p8), %s906_s22, 128  }
 0x1d0   : > { %1125 = vsyncadd (%p1029_p8), %s906_s22, 4294967168  ;;  %p14_p9 = scmp.ge.s32.totalorder %s1194_s21, 4   ;;  %s1352_s15 = smov %s1132_s16 }
 0x1d1   : > { %s1353_s16 = smov %s1136_s17  ;;  %s1354_s17 = smov %s1205_s24 }
 0x1d2   : > { %s1355_s18 = smov %s1194_s21  ;;  %16 = sbr.rel (!%p14_p9) target bundleno = 3 (0x3), region = 80 }
 0x1d7   :  { %912 = vsyncpa [#allocation3], 1 }
 0x1d8   :  { %914 = vsyncpa [#allocation3 + $0x1], 1 }

</bundles_post_ra>
